<compile_context>
chip_gen: v7x
topology: tpu7x:2x2x1
jax: 0.10.0
libtpu: 0.0.40
codegen_flags: <defaults>
</compile_context>

<pallas_src>
from typing import NamedTuple, Optional

import jax
import jax.numpy as jnp
from jax.experimental import pallas as pl
from jax.experimental.pallas import tpu as pltpu


class EmbedReturn(NamedTuple):
    emb: Optional[jax.Array] = None
    time_emb: Optional[jax.Array] = None
    style: Optional[jax.Array] = None


def _time_embed_kernel(x_ref, w1_ref, w2_ref, b_ref, o_ref):
    # x_ref:  (B, Cin)   bf16
    # w1_ref: (Cin, Cout) bf16
    # w2_ref: (Cout, Cout) bf16
    # b_ref:  (2, Cout)  f32   (row 0 = b1, row 1 = b2)
    # o_ref:  (B, Cout)  f32

    # First linear: bf16 x bf16 -> f32 accumulation on the MXU.
    h = jnp.dot(x_ref[...], w1_ref[...], preferred_element_type=jnp.float32)
    h = h + b_ref[0:1, :]                     # bias add in f32 (broadcast over B)

    # SiLU in f32 (VPU + EUP); keep f32 for v5e which has no bf16 VPU/EUP.
    h = h * jax.nn.sigmoid(h)

    # Second linear: cast activation to bf16 for the MXU, accumulate in f32.
    o = jnp.dot(h.astype(w2_ref.dtype), w2_ref[...],
                preferred_element_type=jnp.float32)
    o = o + b_ref[1:2, :]
    o_ref[...] = o.astype(o_ref.dtype)


def time_embed_mlp(x, w1_bf16, w2_bf16, biases_f32, out_dtype):
    """x: (B, Cin); w1: (Cin, Cout) bf16; w2: (Cout, Cout) bf16; biases: (2, Cout) f32."""
    B, Cin = x.shape
    Cout = w1_bf16.shape[1]

    x_bf = x.astype(jnp.bfloat16)

    # Advisory cost hint: tiny kernel, don't let XLA serialize big work around it.
    flops = 2 * B * (Cin + Cout) * Cout
    bytes_accessed = (
        B * Cin * 2                # x (bf16)
        + Cin * Cout * 2           # w1 (bf16)
        + Cout * Cout * 2          # w2 (bf16)
        + 2 * Cout * 4             # biases (f32)
        + B * Cout * jnp.dtype(out_dtype).itemsize  # output
    )
    cost = pl.CostEstimate(flops=flops,
                           transcendentals=B * Cout,
                           bytes_accessed=bytes_accessed)

    vmem_spec = pl.BlockSpec(memory_space=pltpu.MemorySpace.VMEM)

    return pl.pallas_call(
        _time_embed_kernel,
        out_shape=jax.ShapeDtypeStruct((B, Cout), out_dtype),
        in_specs=[vmem_spec, vmem_spec, vmem_spec, vmem_spec],
        out_specs=vmem_spec,
        cost_estimate=cost,
    )(x_bf, w1_bf16, w2_bf16, biases_f32)


class TimeStyleSeperateEmbed:
    """JAX/Pallas port of DiffAE's TimeStyleSeperateEmbed."""

    def __init__(self, time_channels, time_out_channels, key):
        k1, k2, k3, k4 = jax.random.split(key, 4)
        # Deterministic synthetic init (nn.Linear-style shapes, stored as
        # (in, out) for the x @ W convention). f32 masters kept for reference.
        s1 = 1.0 / jnp.sqrt(time_channels)
        s2 = 1.0 / jnp.sqrt(time_out_channels)
        self.w1 = jax.random.uniform(k1, (time_channels, time_out_channels),
                                     jnp.float32, -s1, s1)
        self.b1 = jax.random.uniform(k2, (time_out_channels,),
                                     jnp.float32, -s1, s1)
        self.w2 = jax.random.uniform(k3, (time_out_channels, time_out_channels),
                                     jnp.float32, -s2, s2)
        self.b2 = jax.random.uniform(k4, (time_out_channels,),
                                     jnp.float32, -s2, s2)

        # Pre-cast / pre-pack kernel operands once (not per call).
        self.w1_bf16 = self.w1.astype(jnp.bfloat16)
        self.w2_bf16 = self.w2.astype(jnp.bfloat16)
        self.biases = jnp.stack([self.b1, self.b2], axis=0)  # (2, Cout) f32

    def __call__(self, time_emb=None, cond=None, **kwargs):
        if time_emb is None:
            out_time = None
        else:
            out_time = time_embed_mlp(time_emb, self.w1_bf16, self.w2_bf16,
                                      self.biases, time_emb.dtype)
        style = cond  # nn.Identity
        return EmbedReturn(emb=style, time_emb=out_time, style=style)


if __name__ == "__main__":
    key = jax.random.PRNGKey(0)
    k_params, k_t, k_c = jax.random.split(key, 3)

    B = 8
    time_channels = 32
    time_out_channels = 128
    cond_channels = 128

    module = TimeStyleSeperateEmbed(time_channels, time_out_channels, k_params)

    time_emb = jax.random.normal(k_t, (B, time_channels), jnp.float32)
    cond = jax.random.normal(k_c, (B, cond_channels), jnp.float32)

    out = module(time_emb=time_emb, cond=cond)
    jax.block_until_ready(out.time_emb)

    # Reference 1: same bf16 numerics as the kernel (tight tolerance).
    h_bf = jnp.dot(time_emb.astype(jnp.bfloat16), module.w1_bf16,
                   preferred_element_type=jnp.float32) + module.b1
    h_bf = h_bf * jax.nn.sigmoid(h_bf)
    t_bf = jnp.dot(h_bf.astype(jnp.bfloat16), module.w2_bf16,
                   preferred_element_type=jnp.float32) + module.b2

    # Reference 2: full f32 math (loose tolerance; sanity vs. PyTorch semantics).
    h_f32 = time_emb @ module.w1 + module.b1
    h_f32 = h_f32 * jax.nn.sigmoid(h_f32)
    t_f32 = h_f32 @ module.w2 + module.b2

    assert out.time_emb.shape == (B, time_out_channels)
    assert out.time_emb.dtype == time_emb.dtype
    assert jnp.allclose(out.time_emb, t_bf, atol=2e-3, rtol=2e-3)
    assert jnp.allclose(out.time_emb, t_f32, atol=3e-2, rtol=3e-2)
    assert out.emb is cond and out.style is cond

    # None path (matches PyTorch: time_emb stays None, style passthrough).
    out_none = module(time_emb=None, cond=cond)
    assert out_none.time_emb is None and out_none.style is cond

    print("KERNEL_OK")
</pallas_src>

<mosaic_0001>
module attributes {stable_mosaic.version = 11 : i64} {
  func.func @_time_embed_kernel(%arg0: memref<8x32xbf16, #tpu.memory_space<vmem>>, %arg1: memref<32x128xbf16, #tpu.memory_space<vmem>>, %arg2: memref<128x128xbf16, #tpu.memory_space<vmem>>, %arg3: memref<2x128xf32, #tpu.memory_space<vmem>>, %arg4: memref<8x128xf32, #tpu.memory_space<vmem>>) attributes {dimension_semantics = [], scalar_prefetch = 0 : i64, scratch_operands = 0 : i64, tpu.core_type = #tpu.core_type<tc>} {
    %c0 = arith.constant 0 : index
    %c0_0 = arith.constant 0 : index
    %0 = vector.load %arg0[%c0, %c0_0] : memref<8x32xbf16, #tpu.memory_space<vmem>>, vector<8x32xbf16>
    %c0_1 = arith.constant 0 : index
    %c0_2 = arith.constant 0 : index
    %1 = vector.load %arg1[%c0_1, %c0_2] : memref<32x128xbf16, #tpu.memory_space<vmem>>, vector<32x128xbf16>
    %cst = arith.constant dense<0.000000e+00> : vector<8x128xf32>
    %2 = tpu.matmul %0, %1, %cst {dimension_numbers = #tpu.dot_dimension_numbers<[1], [0], [0], [1], [0, 0, 1, 1], [], []>} : vector<8x32xbf16>, vector<32x128xbf16>, vector<8x128xf32> -> vector<8x128xf32>
    %c0_3 = arith.constant 0 : index
    %c0_4 = arith.constant 0 : index
    %3 = vector.load %arg3[%c0_3, %c0_4] : memref<2x128xf32, #tpu.memory_space<vmem>>, vector<1x128xf32>
    %4 = vector.broadcast %3 : vector<1x128xf32> to vector<8x128xf32>
    %5 = arith.addf %2, %4 : vector<8x128xf32>
    %6 = arith.negf %5 : vector<8x128xf32>
    %7 = math.exp %6 : vector<8x128xf32>
    %cst_5 = arith.constant 1.000000e+00 : f32
    %8 = vector.broadcast %cst_5 : f32 to vector<8x128xf32>
    %9 = arith.addf %8, %7 : vector<8x128xf32>
    %10 = arith.divf %8, %9 : vector<8x128xf32>
    %11 = arith.mulf %5, %10 : vector<8x128xf32>
    %12 = arith.truncf %11 : vector<8x128xf32> to vector<8x128xbf16>
    %c0_6 = arith.constant 0 : index
    %c0_7 = arith.constant 0 : index
    %13 = vector.load %arg2[%c0_6, %c0_7] : memref<128x128xbf16, #tpu.memory_space<vmem>>, vector<128x128xbf16>
    %cst_8 = arith.constant dense<0.000000e+00> : vector<8x128xf32>
    %14 = tpu.matmul %12, %13, %cst_8 {dimension_numbers = #tpu.dot_dimension_numbers<[1], [0], [0], [1], [0, 0, 1, 1], [], []>} : vector<8x128xbf16>, vector<128x128xbf16>, vector<8x128xf32> -> vector<8x128xf32>
    %c1 = arith.constant 1 : index
    %c0_9 = arith.constant 0 : index
    %15 = vector.load %arg3[%c1, %c0_9] : memref<2x128xf32, #tpu.memory_space<vmem>>, vector<1x128xf32>
    %16 = vector.broadcast %15 : vector<1x128xf32> to vector<8x128xf32>
    %17 = arith.addf %14, %16 : vector<8x128xf32>
    %c0_10 = arith.constant 0 : index
    %c0_11 = arith.constant 0 : index
    %18 = vector.load %arg4[%c0_10, %c0_11] : memref<8x128xf32, #tpu.memory_space<vmem>>, vector<8x128xf32>
    tpu.vector_store %arg4[%c0_10, %c0_11], %17 {strides = array<i32>} : memref<8x128xf32, #tpu.memory_space<vmem>>, vector<8x128xf32>,
    return
  }
}

</mosaic_0001>

<bundles_post_ra>
// kernel: tpu_custom_call.1
= control target key start
LH: loop header
LB: loop body
LE: loop exit
PB: predicated region body
PF: predicated region fallthrough
CT: control target
= control target key end

     0   :  { %9 = vsyncpa [#allocation3], 0  ;;  %s521_s0 = inlined_call_operand.hbm [shape: bf16[8,32], index: 0, kind: input, shape index: {}]   ;;  %s522_s1 = inlined_call_operand.hbm [shape: bf16[32,128], index: 1, kind: input, shape index: {}]   ;;  %s523_s2 = inlined_call_operand.hbm [shape: bf16[128,128], index: 2, kind: input, shape index: {}]   ;;  %s524_s3 = inlined_call_operand.vmem [shape: f32[2,128], index: 3, kind: input, shape index: {}]   ;;  %s525_s4 = inlined_call_operand.hbm [shape: f32[8,128], index: 4, kind: output, shape index: {}]  }
   0x1   :  { %10 = vsyncpa [#allocation6], 0 }
   0x2   :  { %11 = vsyncpa [#allocation4], 0  ;;  %s428_s15 = smov [#allocation5]   ;;  %s334_s19 = scalar_lea.hbm %s522_s1, 256 }
   0x3   :  { %s27_s16 = sshll.u32 %s428_s15, 4  ;;  %p335_p0 = scmp.ne.s32.totalorder %s522_s1, %s334_s19  ;;  %s28_s16 = int_to_ptr.vmem [resolvable:$true] %s27_s16 }
   0x4   :  { %p338_p1 = scmp.lt.u32.totalorder %s334_s19, %s522_s1 }
   0x6   :  { %p340_p2 = pnand %p338_p1, %p335_p0 }
   0x8   :  { %343 = shalt.err (!%p340_p2)
}
   0x9   :  { %s344_s24 = scalar_lea.vmem %s28_s16, 256  ;;  %p349_p4 = scmp.lt.s32.totalorder %s28_s16, %s28_s16 }
   0xa   :  { %p345_p3 = scmp.ne.s32.totalorder %s28_s16, %s344_s24  ;;  %p350_p5 = scmp.lt.s32.totalorder %s344_s24, %s344_s24 }
   0xc   :  { %p351_p6 = por %p350_p5, %p349_p4 }
   0xe   :  { %p352_p7 = pnand %p351_p6, %p345_p3 }
  0x10   :  { %355 = shalt.err (!%p352_p7)
}
  0x11   :  { %s429_s25 = smov 64   ;;  %s430_s26 = smov 4  }
  0x12   :  { %33 = dma.hbm_to_vmem [thread:$0]  %s522_s1, 256, %s28_s16, [#allocation6], %s429_s25, %s429_s25, %s430_s26  }
  0x13   :  { %s431_s29 = smov [#allocation2]   ;;  %s432_s5 = smov [#allocation7]  }
  0x14   :  { %s18_s30 = sshll.u32 %s431_s29, 4  ;;  %s39_s6 = sshll.u32 %s432_s5, 4  ;;  %s19_s30 = int_to_ptr.vmem [resolvable:$true] %s18_s30  ;;  %s40_s6 = int_to_ptr.vmem [resolvable:$true] %s39_s6 }
  0x15   :  { %s356_s9 = scalar_lea.hbm %s521_s0, 64 }
  0x16   :  { %p357_p8 = scmp.ne.s32.totalorder %s521_s0, %s356_s9  ;;  %p360_p9 = scmp.lt.u32.totalorder %s356_s9, %s521_s0 }
  0x18   :  { %p362_p10 = pnand %p360_p9, %p357_p8 }
  0x1a   :  { %365 = shalt.err (!%p362_p10)
}
  0x1b   :  { %s366_s1 = scalar_lea.vmem %s19_s30, 64  ;;  %p371_p12 = scmp.lt.s32.totalorder %s19_s30, %s19_s30 }
  0x1c   :  { %p367_p11 = scmp.ne.s32.totalorder %s19_s30, %s366_s1  ;;  %p372_p13 = scmp.lt.s32.totalorder %s366_s1, %s366_s1 }
  0x1e   :  { %p373_p0 = por %p372_p13, %p371_p12 }
  0x20   :  { %p374_p1 = pnand %p373_p0, %p367_p11 }
  0x22   :  { %377 = shalt.err (!%p374_p1)
}
  0x23   :  { %21 = dma.hbm_to_vmem [thread:$0]  %s521_s0, 64, %s19_s30, [#allocation3]  }
  0x24   :  { %s378_s18 = scalar_lea.hbm %s523_s2, 1024 }
  0x25   :  { %p379_p2 = scmp.ne.s32.totalorder %s523_s2, %s378_s18  ;;  %p382_p3 = scmp.lt.u32.totalorder %s378_s18, %s523_s2 }
  0x27   :  { %p384_p4 = pnand %p382_p3, %p379_p2 }
  0x29   :  { %387 = shalt.err (!%p384_p4)
}
  0x2a   :  { %s388_s23 = scalar_lea.vmem %s40_s6, 1024  ;;  %p393_p6 = scmp.lt.s32.totalorder %s40_s6, %s40_s6 }
  0x2b   :  { %p389_p5 = scmp.ne.s32.totalorder %s40_s6, %s388_s23  ;;  %p394_p7 = scmp.lt.s32.totalorder %s388_s23, %s388_s23 }
  0x2d   :  { %p395_p8 = por %p394_p7, %p393_p6 }
  0x2f   :  { %p396_p9 = pnand %p395_p8, %p389_p5 }
  0x31   :  { %399 = shalt.err (!%p396_p9)
}
  0x32   :  { %45 = dma.hbm_to_vmem [thread:$0]  %s523_s2, 1024, %s40_s6, [#allocation6], %s429_s25, %s429_s25, %s430_s26  }
  0x33   :  { %422 = dma.done.wait [#allocation3], 64  }
  0x34   :  { %423 = vsyncadd [#allocation3], 4294967232 }
  0x35   :  { %424 = dma.done.wait [#allocation6], 1280  }
  0x36   :  { %425 = vsyncadd [#allocation6], 4294966016  ;;  %v433_v0 = vmov 0.0   ;;  %vm434_vm0 = vmmov 0   ;;  %v320_v1 = vld [vmem:[#allocation5] sm:$0xff]   ;;  %v321_v2 = vld [vmem:[#allocation5 + $0x8] sm:$0xff]  }
  0x37   :  { %284 = vmatprep.subr.bf16.mxu0 %v433_v0  ;;  %288 = vmatprep.mubr.msk.bf16.mxu0 %vm434_vm0, %v433_v0  ;;  %vm80_vm1 = vcmask 261120   ;;  %v58_v3 = vld [vmem:[#allocation2] sm:$0xf]  ;;  %v322_v4 = vld [vmem:[#allocation7] sm:$0xff]   ;;  %v324_v6 = vld [vmem:[#allocation7 + $0x10] sm:$0xff]   ;;  %s435_s28 = smov [#allocation8]  }
  0x38   :  { %292 = vmatprep.subr.bf16.mxu1 %v433_v0  ;;  %308 = vmatprep.mubr.msk.bf16.mxu1 %vm434_vm0, %v433_v0  ;;  %v323_v5 = vld [vmem:[#allocation7 + $0x8] sm:$0xff]   ;;  %v325_v7 = vld [vmem:[#allocation7 + $0x18] sm:$0xff]   ;;  %v326_v8 = vld [vmem:[#allocation7 + $0x20] sm:$0xff]   ;;  %s248_s29 = sshll.u32 %s435_s28, 4  ;;  %s249_s29 = int_to_ptr.vmem [resolvable:$true] %s248_s29 }
  0x39   :  { %285 = vmatpush3.bf16.msra.mxu0 %v320_v1  ;;  %293 = vmatpush3.bf16.msra.mxu1 %v322_v4  ;;  %v327_v9 = vld [vmem:[#allocation7 + $0x28] sm:$0xff]   ;;  %v328_v10 = vld [vmem:[#allocation7 + $0x30] sm:$0xff]   ;;  %v329_v11 = vld [vmem:[#allocation7 + $0x38] sm:$0xff]   ;;  %s400_s30 = scalar_lea.vmem %s249_s29, 128  ;;  %p405_p11 = scmp.lt.s32.totalorder %s249_s29, %s249_s29 }
  0x3a   :  { %286 = vmatprep.subr.bf16.mxu0 %v433_v0  ;;  %294 = vmatprep.subr.bf16.mxu1 %v433_v0  ;;  %v258_v12 = vld [vmem:[%s524_s3] ss:$0 sm:$0xff]  ;;  %v263_v24 = vld [vmem:[%s524_s3 + $0x1] ss:$0 sm:$0xff]  ;;  %p401_p10 = scmp.ne.s32.totalorder %s249_s29, %s400_s30  ;;  %p406_p12 = scmp.lt.s32.totalorder %s400_s30, %s400_s30 }
  0x3c   :  { %p407_p13 = por %p406_p12, %p405_p11 }
  0x3d   :  { %287 = vmatpush3.bf16.msra.mxu0 %v321_v2  ;;  %295 = vmatpush3.bf16.msra.mxu1 %v323_v5 }
  0x3e   :  { %296 = vmatprep.subr.bf16.mxu1 %v433_v0  ;;  %p408_p0 = pnand %p407_p13, %p401_p10 }
  0x40   :  { %289 = vmatmul.mubr.msk.bf16.vlgmr.msra.gmra.mrb[0].mxu0 %vm80_vm1, %v58_v3 }
  0x41   :  { %297 = vmatpush3.bf16.msra.mxu1 %v324_v6 }
  0x42   :  { %298 = vmatprep.subr.bf16.mxu1 %v433_v0 }
  0x45   :  { %299 = vmatpush3.bf16.msra.mxu1 %v325_v7 }
  0x46   :  { %300 = vmatprep.subr.bf16.mxu1 %v433_v0 }
  0x49   :  { %301 = vmatpush3.bf16.msra.mxu1 %v326_v8 }
  0x4a   :  { %302 = vmatprep.subr.bf16.mxu1 %v433_v0 }
  0x4d   :  { %303 = vmatpush3.bf16.msra.mxu1 %v327_v9 }
  0x4e   :  { %304 = vmatprep.subr.bf16.mxu1 %v433_v0 }
  0x51   :  { %305 = vmatpush3.bf16.msra.mxu1 %v328_v10 }
  0x52   :  { %306 = vmatprep.subr.bf16.mxu1 %v433_v0 }
  0x55   :  { %307 = vmatpush3.bf16.msra.mxu1 %v329_v11 }
 0x113   :  { %v118_v13 = vpop.f32.mrb[0].mxu0 }
 0x114   :  { %v119_v14 = vadd.f32 %v258_v12, %v118_v13  ;;  %v290_v15 = vpop.f32.mrb[1].mxu0 }
 0x115   :  { %v121_v16 = vpop.f32.mrb[2].mxu0 }
 0x116   :  { %v262_v17 = vmul.f32 -1.442695, %v119_v14  ;;  %v291_v18 = vpop.f32.mrb[3].mxu0 }
 0x118   :  { %330 = vpow2.f32 %v262_v17 }
 0x122   :  { %v331_v19 = vpop.eup %330 }
 0x123   :  { %v127_v20 = vadd.f32 1.0, %v331_v19 }
 0x125   :  { %332 = vrcp.f32 %v127_v20 }
 0x12f   :  { %v333_v21 = vpop.eup %332 }
 0x130   :  { %v130_v22 = vmul.f32 %v333_v21, %v119_v14 }
 0x132   :  { %v131_v23 = vpack.c.bf16 %v130_v22, %v130_v22 }
 0x134   :  { %309 = vmatmul.mubr.bf16.vlgmr.msra.gmra.mrb[0].mxu1 %v131_v23 }
 0x207   :  { %v235_v25 = vpop.f32.mrb[0].mxu1 }
 0x208   :  { %v236_v26 = vadd.f32 %v263_v24, %v235_v25  ;;  %v310_v27 = vpop.f32.mrb[1].mxu1 }
 0x209   :  { %v238_v28 = vpop.f32.mrb[2].mxu1 }
 0x20a   :  { %241 = vst [vmem:[#allocation8] sm:$0xff] %v236_v26  ;;  %v311_v29 = vpop.f32.mrb[3].mxu1 }
 0x20b   :  { %411 = shalt.err (!%p408_p0)
}
 0x20c   :  { %s412_s3 = scalar_lea.hbm %s525_s4, 128 }
 0x20d   :  { %p413_p1 = scmp.ne.s32.totalorder %s525_s4, %s412_s3  ;;  %p416_p2 = scmp.lt.u32.totalorder %s412_s3, %s525_s4 }
 0x20f   :  { %p418_p3 = pnand %p416_p2, %p413_p1 }
 0x211   :  { %421 = shalt.err (!%p418_p3)
}
 0x212   :  { %251 = dma.vmem_to_hbm [thread:$0]  %s249_s29, 128, %s525_s4, [#allocation4]  }
 0x213   :  { %426 = dma.done.wait [#allocation4], 128  }
 0x214   :  { %427 = vsyncadd [#allocation4], 4294967168 }
 0x215   :  { %255 = vsyncpa [#allocation3], 1 }
 0x216   :  { %256 = vsyncpa [#allocation6], 1 }
 0x217   :  { %257 = vsyncpa [#allocation4], 1 }

</bundles_post_ra>
